<compile_context>
chip_gen: v5e
topology: v5e:2x2
jax: 0.10.0
libtpu: 0.0.40
codegen_flags: <defaults>
</compile_context>

<pallas_src>
import jax
import jax.numpy as jnp
import numpy as np
from jax.experimental import pallas as pl
from jax.experimental.pallas import tpu as pltpu

EPS = 1e-5  # PyTorch LayerNorm default eps


# ---------------------------------------------------------------------------
# host-side helpers: pooling operators as matrices
# ---------------------------------------------------------------------------
def avgpool_matrix(L_in, kernel, stride, pad):
    """P (L_in, L_out) s.t. x @ P == AvgPool1d(kernel, stride, pad)(x) with
    count_include_pad=True (PyTorch default => constant divisor)."""
    L_out = (L_in + 2 * pad - kernel) // stride + 1
    i = np.arange(L_in)[:, None]
    j = np.arange(L_out)[None, :]
    start = j * stride - pad
    mask = (i >= start) & (i < start + kernel)
    return jnp.asarray(mask.astype(np.float32) / float(kernel))


# ---------------------------------------------------------------------------
# single fused kernel, collapsed (B*L, N*D) lane-dense layout
# ---------------------------------------------------------------------------
def projection_kernel(x_ref, w1_ref, b1_ref, g1_ref, be1_ref, mavg_ref,
                      w2_ref, b2_ref, ml_ref, g2_ref, be2_ref, o_ref):
    x = x_ref[...]                                                     # (B*L, N*C)

    # -- channel projection: pool + linear + LN mean-centering folded in w1c/b1c
    zc = jnp.dot(x, w1_ref[...], preferred_element_type=jnp.float32) + b1_ref[...]   # zero-mean per D-group
    var = jnp.dot(zc * zc, mavg_ref[...], preferred_element_type=jnp.float32)        # per-(row, group) var, pre-broadcast
    h = zc * (jax.lax.rsqrt(var + EPS) * g1_ref[...]) + be1_ref[...]
    h = jnp.maximum(h, 0.0)                                            # (B*L, N*D)

    # -- temporal projection: mix + linear + LN(L) mean-centering folded in w2c/b2c
    #    (applied as a LEFT matmul over rows; block-diagonal over batch)
    tc = jnp.dot(w2_ref[...], h, preferred_element_type=jnp.float32) + b2_ref[...]   # zero-mean per L-block
    var_t = jnp.dot(ml_ref[...], tc * tc, preferred_element_type=jnp.float32)        # per-(batch block, lane) var
    tn = tc * (jax.lax.rsqrt(var_t + EPS) * g2_ref[...]) + be2_ref[...]
    o_ref[...] = jnp.maximum(tn, 0.0).astype(o_ref.dtype)
    # TODO(synk): nn.Dropout(0.1) omitted -- inference-mode identity.


def projection_block_forward(x, params):
    # x: (B, L, N, C)
    B, L, N, C = x.shape
    BL, NC = B * L, N * C
    ND = params["w1c"].shape[1]

    x2 = x.reshape(BL, NC)  # free: natural memory layout, lane index = n*C + c

    out2 = pl.pallas_call(
        projection_kernel,
        out_shape=jax.ShapeDtypeStruct((BL, ND), jnp.float32),
        grid=(1,),
        in_specs=[
            pl.BlockSpec((BL, NC), lambda i: (0, 0)),   # x (collapsed batch)
            pl.BlockSpec((NC, ND), lambda i: (0, 0)),   # w1c  (pool.linear.(I-mavg), block-diag)
            pl.BlockSpec((BL, ND), lambda i: (0, 0)),   # b1c  (pre-broadcast)
            pl.BlockSpec((BL, ND), lambda i: (0, 0)),   # gamma1
            pl.BlockSpec((BL, ND), lambda i: (0, 0)),   # beta1
            pl.BlockSpec((ND, ND), lambda i: (0, 0)),   # group-average matrix (variance)
            pl.BlockSpec((BL, BL), lambda i: (0, 0)),   # w2c  (centered left operator, block-diag over B)
            pl.BlockSpec((BL, ND), lambda i: (0, 0)),   # b2c  (pre-broadcast, centered)
            pl.BlockSpec((BL, BL), lambda i: (0, 0)),   # row-block mean matrix (variance)
            pl.BlockSpec((BL, ND), lambda i: (0, 0)),   # gamma2
            pl.BlockSpec((BL, ND), lambda i: (0, 0)),   # beta2
        ],
        out_specs=pl.BlockSpec((BL, ND), lambda i: (0, 0)),
        compiler_params=pltpu.CompilerParams(dimension_semantics=("arbitrary",)),
    )(x2, params["w1c"], params["b1c"], params["g1b"], params["be1b"],
      params["mavg"], params["w2c"], params["b2c"], params["mL"],
      params["g2b"], params["be2b"])
    return out2.reshape(B, L, ND)  # (B, L, N*D), column index = n*D + d == 'b l (n c)'


def build_params(w1, b1, g1, be1, w2, b2, g2, be2, *, B, L, N, C, D):
    """Fold pools, linears, and LayerNorm mean-centering into the kernel's
    fused operators (host side)."""
    BL, NC, ND = B * L, N * C, N * D

    # ---- channel path: AvgPool1d(4,2,1) . Linear(C/2, D), block-diag over N,
    #      with LayerNorm(D) mean-centering folded in -------------------------
    pool_c = avgpool_matrix(C, kernel=4, stride=2, pad=1)                  # (C, C//2)
    w1_eff = pool_c @ w1.T                                                 # (C, D)
    eye_n = jnp.eye(N, dtype=jnp.float32)
    w1_bd = jnp.kron(eye_n, w1_eff)                                        # (NC, ND) block-diag
    mavg = jnp.kron(eye_n, jnp.full((D, D), 1.0 / D, jnp.float32))         # (ND, ND) group mean
    center_d = jnp.eye(ND, dtype=jnp.float32) - mavg
    w1c = w1_bd @ center_d                                                 # mean-centered projection
    b1c = jnp.tile(b1, N) @ center_d                                       # (ND,) centered bias

    # ---- temporal path: (4I + 2*pool3 + pool5)/7 . Linear(L, L) as a LEFT
    #      operator over rows, block-diag over B, LN(L) centering folded -----
    p3 = avgpool_matrix(L, kernel=3, stride=1, pad=1)                      # (L, L)
    p5 = avgpool_matrix(L, kernel=5, stride=1, pad=2)                      # (L, L)
    mix = (4.0 * jnp.eye(L, dtype=jnp.float32) + 2.0 * p3 + p5) / 7.0
    w2_eff = mix @ w2.T                                                    # (L, L): y = h_L @ w2_eff
    center_l = jnp.eye(L, dtype=jnp.float32) - jnp.full((L, L), 1.0 / L, jnp.float32)
    eye_b = jnp.eye(B, dtype=jnp.float32)
    w2c = jnp.kron(eye_b, center_l @ w2_eff.T)                             # (BL, BL) centered left op
    mL = jnp.kron(eye_b, jnp.full((L, L), 1.0 / L, jnp.float32))           # (BL, BL) row-block mean
    b2_cent = b2 - jnp.mean(b2)                                            # centered bias, per l

    def bcast_lane(v):   # (ND,) -> lane-dense (BL, ND)
        return jnp.broadcast_to(v.reshape(1, ND), (BL, ND)).astype(jnp.float32)

    def bcast_row(v):    # (L,) per-row param -> lane-dense (BL, ND)
        return jnp.broadcast_to(jnp.tile(v, B).reshape(BL, 1), (BL, ND)).astype(jnp.float32)

    return dict(
        w1c=w1c,
        b1c=bcast_lane(b1c),
        g1b=bcast_lane(jnp.tile(g1, N)),
        be1b=bcast_lane(jnp.tile(be1, N)),
        mavg=mavg,
        w2c=w2c,
        b2c=bcast_row(b2_cent),
        mL=mL,
        g2b=bcast_row(g2),
        be2b=bcast_row(be2),
    )


# ---------------------------------------------------------------------------
# plain-JAX reference (independent implementation of the original module)
# ---------------------------------------------------------------------------
def _avgpool1d_ref(x, kernel, stride, pad):
    Lin = x.shape[-1]
    xp = jnp.pad(x, [(0, 0)] * (x.ndim - 1) + [(pad, pad)])
    L_out = (Lin + 2 * pad - kernel) // stride + 1
    cols = [xp[..., j * stride:j * stride + kernel] for j in range(L_out)]
    return jnp.stack(cols, axis=-2).mean(-1)


def _layernorm_ref(x, g, b):
    mu = x.mean(-1, keepdims=True)
    var = ((x - mu) ** 2).mean(-1, keepdims=True)
    return (x - mu) / jnp.sqrt(var + EPS) * g + b


def reference_forward(x, w1, b1, g1, be1, w2, b2, g2, be2):
    B, L, N, C = x.shape
    D = w1.shape[0]
    h = x.reshape(B, L * N, C)
    h = _avgpool1d_ref(h, 4, 2, 1)
    h = h @ w1.T + b1
    h = jnp.maximum(_layernorm_ref(h, g1, be1), 0.0)
    h = h.reshape(B, L, N, D)
    h = jnp.transpose(h, (0, 3, 2, 1)).reshape(B, D * N, L)
    h = (h * 4 + _avgpool1d_ref(h, 3, 1, 1) * 2 + _avgpool1d_ref(h, 5, 1, 2)) / 7.0
    h = h @ w2.T + b2
    h = jnp.maximum(_layernorm_ref(h, g2, be2), 0.0)
    h = h.reshape(B, D, N, L)
    return jnp.transpose(h, (0, 3, 2, 1)).reshape(B, L, N * D)


# ---------------------------------------------------------------------------
if __name__ == "__main__":
    # shapes consistent with the module; N * D_MODEL = 128 (full lane width)
    B, LENGTH, RXTX, IN_CH, D_MODEL = 2, 8, 4, 8, 32

    key = jax.random.PRNGKey(0)
    kx, kw1, kb1, kg1, kbe1, kw2, kb2, kg2, kbe2 = jax.random.split(key, 9)

    x = jax.random.normal(kx, (B, LENGTH, RXTX, IN_CH), dtype=jnp.float32)

    w1 = jax.random.normal(kw1, (D_MODEL, IN_CH // 2), dtype=jnp.float32) * 0.2   # Linear(C//2, D)
    b1 = jax.random.normal(kb1, (D_MODEL,), dtype=jnp.float32) * 0.1
    g1 = 1.0 + 0.1 * jax.random.normal(kg1, (D_MODEL,), dtype=jnp.float32)
    be1 = 0.1 * jax.random.normal(kbe1, (D_MODEL,), dtype=jnp.float32)
    w2 = jax.random.normal(kw2, (LENGTH, LENGTH), dtype=jnp.float32) * 0.2        # Linear(L, L)
    b2 = jax.random.normal(kb2, (LENGTH,), dtype=jnp.float32) * 0.1
    g2 = 1.0 + 0.1 * jax.random.normal(kg2, (LENGTH,), dtype=jnp.float32)
    be2 = 0.1 * jax.random.normal(kbe2, (LENGTH,), dtype=jnp.float32)

    params = build_params(w1, b1, g1, be1, w2, b2, g2, be2,
                          B=B, L=LENGTH, N=RXTX, C=IN_CH, D=D_MODEL)

    out = jax.block_until_ready(projection_block_forward(x, params))
    ref = reference_forward(x, w1, b1, g1, be1, w2, b2, g2, be2)

    assert out.shape == (B, LENGTH, RXTX * D_MODEL), out.shape
    np.testing.assert_allclose(np.asarray(out), np.asarray(ref), atol=1e-4, rtol=1e-4)

    print("KERNEL_OK")
</pallas_src>

<mosaic_0001>
module attributes {stable_mosaic.version = 11 : i64} {
  func.func @projection_kernel(%arg0: i32, %arg1: memref<16x32xf32, #tpu.memory_space<vmem>>, %arg2: memref<32x128xf32, #tpu.memory_space<vmem>>, %arg3: memref<16x128xf32, #tpu.memory_space<vmem>>, %arg4: memref<16x128xf32, #tpu.memory_space<vmem>>, %arg5: memref<16x128xf32, #tpu.memory_space<vmem>>, %arg6: memref<128x128xf32, #tpu.memory_space<vmem>>, %arg7: memref<16x16xf32, #tpu.memory_space<vmem>>, %arg8: memref<16x128xf32, #tpu.memory_space<vmem>>, %arg9: memref<16x16xf32, #tpu.memory_space<vmem>>, %arg10: memref<16x128xf32, #tpu.memory_space<vmem>>, %arg11: memref<16x128xf32, #tpu.memory_space<vmem>>, %arg12: memref<16x128xf32, #tpu.memory_space<vmem>>) attributes {dimension_semantics = [#tpu.dimension_semantics<arbitrary>], iteration_bounds = array<i64: 1>, scalar_prefetch = 0 : i64, scratch_operands = 0 : i64, tpu.core_type = #tpu.core_type<tc>, window_params = [{pipeline_mode = #tpu.pipeline_mode<synchronous>, transform_indices = @transform_0, window_bounds = array<i64: 16, 32>}, {pipeline_mode = #tpu.pipeline_mode<synchronous>, transform_indices = @transform_1, window_bounds = array<i64: 32, 128>}, {pipeline_mode = #tpu.pipeline_mode<synchronous>, transform_indices = @transform_2, window_bounds = array<i64: 16, 128>}, {pipeline_mode = #tpu.pipeline_mode<synchronous>, transform_indices = @transform_3, window_bounds = array<i64: 16, 128>}, {pipeline_mode = #tpu.pipeline_mode<synchronous>, transform_indices = @transform_4, window_bounds = array<i64: 16, 128>}, {pipeline_mode = #tpu.pipeline_mode<synchronous>, transform_indices = @transform_5, window_bounds = array<i64: 128, 128>}, {pipeline_mode = #tpu.pipeline_mode<synchronous>, transform_indices = @transform_6, window_bounds = array<i64: 16, 16>}, {pipeline_mode = #tpu.pipeline_mode<synchronous>, transform_indices = @transform_7, window_bounds = array<i64: 16, 128>}, {pipeline_mode = #tpu.pipeline_mode<synchronous>, transform_indices = @transform_8, window_bounds = array<i64: 16, 16>}, {pipeline_mode = #tpu.pipeline_mode<synchronous>, transform_indices = @transform_9, window_bounds = array<i64: 16, 128>}, {pipeline_mode = #tpu.pipeline_mode<synchronous>, transform_indices = @transform_10, window_bounds = array<i64: 16, 128>}, {pipeline_mode = #tpu.pipeline_mode<synchronous>, transform_indices = @transform_11, window_bounds = array<i64: 16, 128>}]} {
    %c0 = arith.constant 0 : index
    %c0_0 = arith.constant 0 : index
    %0 = vector.load %arg1[%c0, %c0_0] : memref<16x32xf32, #tpu.memory_space<vmem>>, vector<16x32xf32>
    %c0_1 = arith.constant 0 : index
    %c0_2 = arith.constant 0 : index
    %1 = vector.load %arg2[%c0_1, %c0_2] : memref<32x128xf32, #tpu.memory_space<vmem>>, vector<32x128xf32>
    %cst = arith.constant dense<0.000000e+00> : vector<16x128xf32>
    %2 = tpu.matmul %0, %1, %cst {dimension_numbers = #tpu.dot_dimension_numbers<[1], [0], [0], [1], [0, 0, 1, 1], [], []>} : vector<16x32xf32>, vector<32x128xf32>, vector<16x128xf32> -> vector<16x128xf32>
    %c0_3 = arith.constant 0 : index
    %c0_4 = arith.constant 0 : index
    %3 = vector.load %arg3[%c0_3, %c0_4] : memref<16x128xf32, #tpu.memory_space<vmem>>, vector<16x128xf32>
    %4 = arith.addf %2, %3 : vector<16x128xf32>
    %5 = arith.mulf %4, %4 : vector<16x128xf32>
    %c0_5 = arith.constant 0 : index
    %c0_6 = arith.constant 0 : index
    %6 = vector.load %arg6[%c0_5, %c0_6] : memref<128x128xf32, #tpu.memory_space<vmem>>, vector<128x128xf32>
    %cst_7 = arith.constant dense<0.000000e+00> : vector<16x128xf32>
    %7 = tpu.matmul %5, %6, %cst_7 {dimension_numbers = #tpu.dot_dimension_numbers<[1], [0], [0], [1], [0, 0, 1, 1], [], []>} : vector<16x128xf32>, vector<128x128xf32>, vector<16x128xf32> -> vector<16x128xf32>
    %cst_8 = arith.constant 9.99999974E-6 : f32
    %8 = vector.broadcast %cst_8 : f32 to vector<16x128xf32>
    %9 = arith.addf %7, %8 : vector<16x128xf32>
    %10 = math.rsqrt %9 : vector<16x128xf32>
    %c0_9 = arith.constant 0 : index
    %c0_10 = arith.constant 0 : index
    %11 = vector.load %arg4[%c0_9, %c0_10] : memref<16x128xf32, #tpu.memory_space<vmem>>, vector<16x128xf32>
    %12 = arith.mulf %10, %11 : vector<16x128xf32>
    %13 = arith.mulf %4, %12 : vector<16x128xf32>
    %c0_11 = arith.constant 0 : index
    %c0_12 = arith.constant 0 : index
    %14 = vector.load %arg5[%c0_11, %c0_12] : memref<16x128xf32, #tpu.memory_space<vmem>>, vector<16x128xf32>
    %15 = arith.addf %13, %14 : vector<16x128xf32>
    %cst_13 = arith.constant 0.000000e+00 : f32
    %16 = vector.broadcast %cst_13 : f32 to vector<16x128xf32>
    %17 = arith.maximumf %15, %16 : vector<16x128xf32>
    %c0_14 = arith.constant 0 : index
    %c0_15 = arith.constant 0 : index
    %18 = vector.load %arg7[%c0_14, %c0_15] : memref<16x16xf32, #tpu.memory_space<vmem>>, vector<16x16xf32>
    %cst_16 = arith.constant dense<0.000000e+00> : vector<16x128xf32>
    %19 = tpu.matmul %18, %17, %cst_16 {dimension_numbers = #tpu.dot_dimension_numbers<[1], [0], [0], [1], [0, 0, 1, 1], [], []>} : vector<16x16xf32>, vector<16x128xf32>, vector<16x128xf32> -> vector<16x128xf32>
    %c0_17 = arith.constant 0 : index
    %c0_18 = arith.constant 0 : index
    %20 = vector.load %arg8[%c0_17, %c0_18] : memref<16x128xf32, #tpu.memory_space<vmem>>, vector<16x128xf32>
    %21 = arith.addf %19, %20 : vector<16x128xf32>
    %c0_19 = arith.constant 0 : index
    %c0_20 = arith.constant 0 : index
    %22 = vector.load %arg9[%c0_19, %c0_20] : memref<16x16xf32, #tpu.memory_space<vmem>>, vector<16x16xf32>
    %23 = arith.mulf %21, %21 : vector<16x128xf32>
    %cst_21 = arith.constant dense<0.000000e+00> : vector<16x128xf32>
    %24 = tpu.matmul %22, %23, %cst_21 {dimension_numbers = #tpu.dot_dimension_numbers<[1], [0], [0], [1], [0, 0, 1, 1], [], []>} : vector<16x16xf32>, vector<16x128xf32>, vector<16x128xf32> -> vector<16x128xf32>
    %cst_22 = arith.constant 9.99999974E-6 : f32
    %25 = vector.broadcast %cst_22 : f32 to vector<16x128xf32>
    %26 = arith.addf %24, %25 : vector<16x128xf32>
    %27 = math.rsqrt %26 : vector<16x128xf32>
    %c0_23 = arith.constant 0 : index
    %c0_24 = arith.constant 0 : index
    %28 = vector.load %arg10[%c0_23, %c0_24] : memref<16x128xf32, #tpu.memory_space<vmem>>, vector<16x128xf32>
    %29 = arith.mulf %27, %28 : vector<16x128xf32>
    %30 = arith.mulf %21, %29 : vector<16x128xf32>
    %c0_25 = arith.constant 0 : index
    %c0_26 = arith.constant 0 : index
    %31 = vector.load %arg11[%c0_25, %c0_26] : memref<16x128xf32, #tpu.memory_space<vmem>>, vector<16x128xf32>
    %32 = arith.addf %30, %31 : vector<16x128xf32>
    %cst_27 = arith.constant 0.000000e+00 : f32
    %33 = vector.broadcast %cst_27 : f32 to vector<16x128xf32>
    %34 = arith.maximumf %32, %33 : vector<16x128xf32>
    %c0_28 = arith.constant 0 : index
    %c0_29 = arith.constant 0 : index
    %35 = vector.load %arg12[%c0_28, %c0_29] : memref<16x128xf32, #tpu.memory_space<vmem>>, vector<16x128xf32>
    tpu.vector_store %arg12[%c0_28, %c0_29], %34 {strides = array<i32>} : memref<16x128xf32, #tpu.memory_space<vmem>>, vector<16x128xf32>,
    return
  }
  func.func @transform_0(%arg0: i32) -> (i32, i32) {
    %c0_i32 = arith.constant 0 : i32
    %c0_i32_0 = arith.constant 0 : i32
    %c0_i32_1 = arith.constant 0 : i32
    return %c0_i32, %c0_i32_0 : i32, i32
  }
  func.func @transform_1(%arg0: i32) -> (i32, i32) {
    %c0_i32 = arith.constant 0 : i32
    %c0_i32_0 = arith.constant 0 : i32
    %c0_i32_1 = arith.constant 0 : i32
    return %c0_i32, %c0_i32_0 : i32, i32
  }
  func.func @transform_2(%arg0: i32) -> (i32, i32) {
    %c0_i32 = arith.constant 0 : i32
    %c0_i32_0 = arith.constant 0 : i32
    %c0_i32_1 = arith.constant 0 : i32
    return %c0_i32, %c0_i32_0 : i32, i32
  }
  func.func @transform_3(%arg0: i32) -> (i32, i32) {
    %c0_i32 = arith.constant 0 : i32
    %c0_i32_0 = arith.constant 0 : i32
    %c0_i32_1 = arith.constant 0 : i32
    return %c0_i32, %c0_i32_0 : i32, i32
  }
  func.func @transform_4(%arg0: i32) -> (i32, i32) {
    %c0_i32 = arith.constant 0 : i32
    %c0_i32_0 = arith.constant 0 : i32
    %c0_i32_1 = arith.constant 0 : i32
    return %c0_i32, %c0_i32_0 : i32, i32
  }
  func.func @transform_5(%arg0: i32) -> (i32, i32) {
    %c0_i32 = arith.constant 0 : i32
    %c0_i32_0 = arith.constant 0 : i32
    %c0_i32_1 = arith.constant 0 : i32
    return %c0_i32, %c0_i32_0 : i32, i32
  }
  func.func @transform_6(%arg0: i32) -> (i32, i32) {
    %c0_i32 = arith.constant 0 : i32
    %c0_i32_0 = arith.constant 0 : i32
    %c0_i32_1 = arith.constant 0 : i32
    return %c0_i32, %c0_i32_0 : i32, i32
  }
  func.func @transform_7(%arg0: i32) -> (i32, i32) {
    %c0_i32 = arith.constant 0 : i32
    %c0_i32_0 = arith.constant 0 : i32
    %c0_i32_1 = arith.constant 0 : i32
    return %c0_i32, %c0_i32_0 : i32, i32
  }
  func.func @transform_8(%arg0: i32) -> (i32, i32) {
    %c0_i32 = arith.constant 0 : i32
    %c0_i32_0 = arith.constant 0 : i32
    %c0_i32_1 = arith.constant 0 : i32
    return %c0_i32, %c0_i32_0 : i32, i32
  }
  func.func @transform_9(%arg0: i32) -> (i32, i32) {
    %c0_i32 = arith.constant 0 : i32
    %c0_i32_0 = arith.constant 0 : i32
    %c0_i32_1 = arith.constant 0 : i32
    return %c0_i32, %c0_i32_0 : i32, i32
  }
  func.func @transform_10(%arg0: i32) -> (i32, i32) {
    %c0_i32 = arith.constant 0 : i32
    %c0_i32_0 = arith.constant 0 : i32
    %c0_i32_1 = arith.constant 0 : i32
    return %c0_i32, %c0_i32_0 : i32, i32
  }
  func.func @transform_11(%arg0: i32) -> (i32, i32) {
    %c0_i32 = arith.constant 0 : i32
    %c0_i32_0 = arith.constant 0 : i32
    %c0_i32_1 = arith.constant 0 : i32
    return %c0_i32, %c0_i32_0 : i32, i32
  }
}

</mosaic_0001>

<bundles_post_ra>
// kernel: tpu_custom_call.1
= control target key start
LH: loop header
LB: loop body
LE: loop exit
PB: predicated region body
PF: predicated region fallthrough
CT: control target
= control target key end

     0   :  { %16 = vsyncpa [#allocation3], 0  ;;  %s926_s0 = inlined_call_operand.hbm [shape: f32[16,32], index: 0, kind: input, shape index: {}]   ;;  %s927_s1 = inlined_call_operand.hbm [shape: f32[32,128], index: 1, kind: input, shape index: {}]   ;;  %s928_s2 = inlined_call_operand.hbm [shape: f32[16,128], index: 2, kind: input, shape index: {}]   ;;  %s929_s3 = inlined_call_operand.hbm [shape: f32[16,128], index: 3, kind: input, shape index: {}]   ;;  %s930_s4 = inlined_call_operand.hbm [shape: f32[16,128], index: 4, kind: input, shape index: {}]   ;;  %s931_s5 = inlined_call_operand.hbm [shape: f32[128,128], index: 5, kind: input, shape index: {}]   ;;  %s932_s6 = inlined_call_operand.hbm [shape: f32[16,16], index: 6, kind: input, shape index: {}]   ;;  %s933_s7 = inlined_call_operand.hbm [shape: f32[16,128], index: 7, kind: input, shape index: {}]   ;;  %s934_s8 = inlined_call_operand.hbm [shape: f32[16,16], index: 8, kind: input, shape index: {}]   ;;  %s935_s9 = inlined_call_operand.hbm [shape: f32[16,128], index: 9, kind: input, shape index: {}]   ;;  %s936_s10 = inlined_call_operand.hbm [shape: f32[16,128], index: 10, kind: input, shape index: {}]   ;;  %s937_s11 = inlined_call_operand.hbm [shape: f32[16,128], index: 11, kind: output, shape index: {}]  }
   0x1   :  { %17 = vsyncpa [#allocation6], 0 }
   0x2   :  { %18 = vsyncpa [#allocation9], 0 }
   0x3   :  { %19 = vsyncpa [#allocation12], 0 }
   0x4   :  { %20 = vsyncpa [#allocation15], 0 }
   0x5   :  { %21 = vsyncpa [#allocation18], 0 }
   0x6   :  { %22 = vsyncpa [#allocation4], 0  ;;  %s40_s19 = sshll.u32 %s927_s1, 4  ;;  %s776_s20 = smov [#allocation5]   ;;  %s41_s19 = int_to_ptr.hbm [resolvable:$true] %s40_s19 }
   0x7   :  { %s42_s21 = sshll.u32 %s776_s20, 4  ;;  %s66_s24 = sshll.u32 %s929_s3, 4  ;;  %s43_s21 = int_to_ptr.vmem [resolvable:$true] %s42_s21  ;;  %s67_s24 = int_to_ptr.hbm [resolvable:$true] %s66_s24 }
   0x8   :  { %s777_s25 = smov 128   ;;  %s778_s26 = smov 8  }
   0x9   :  { %48 = dma.hbm_to_vmem [thread:$0]  %s41_s19, 512, %s43_s21, [#allocation6], %s777_s25, %s777_s25, %s778_s26  }
   0xa   :  { %s779_s27 = smov [#allocation8]   ;;  %s92_s1 = sshll.u32 %s931_s5, 4  ;;  %s93_s1 = int_to_ptr.hbm [resolvable:$true] %s92_s1 }
   0xb   :  { %s68_s28 = sshll.u32 %s779_s27, 4  ;;  %s118_s13 = sshll.u32 %s933_s7, 4  ;;  %s69_s28 = int_to_ptr.vmem [resolvable:$true] %s68_s28  ;;  %s119_s13 = int_to_ptr.hbm [resolvable:$true] %s118_s13 }
   0xc   :  { %74 = dma.hbm_to_vmem [thread:$0]  %s67_s24, 256, %s69_s28, [#allocation9], %s777_s25, %s777_s25, %s778_s26  }
   0xd   :  { %s780_s14 = smov [#allocation11]   ;;  %s781_s16 = smov [#allocation14]  }
   0xe   :  { %s94_s15 = sshll.u32 %s780_s14, 4  ;;  %s120_s5 = sshll.u32 %s781_s16, 4  ;;  %s95_s15 = int_to_ptr.vmem [resolvable:$true] %s94_s15  ;;  %s121_s5 = int_to_ptr.vmem [resolvable:$true] %s120_s5 }
   0xf   :  { %100 = dma.hbm_to_vmem [thread:$0]  %s93_s1, 2048, %s95_s15, [#allocation12], %s777_s25, %s777_s25, %s778_s26  }
  0x10   :  { %s144_s19 = sshll.u32 %s935_s9, 4  ;;  %s27_s21 = sshll.u32 %s926_s0, 4  ;;  %s145_s19 = int_to_ptr.hbm [resolvable:$true] %s144_s19  ;;  %s28_s21 = int_to_ptr.hbm [resolvable:$true] %s27_s21 }
  0x11   :  { %126 = dma.hbm_to_vmem [thread:$0]  %s119_s13, 256, %s121_s5, [#allocation15], %s777_s25, %s777_s25, %s778_s26  }
  0x12   :  { %s782_s22 = smov [#allocation17]   ;;  %s783_s24 = smov [#allocation2]  }
  0x13   :  { %s146_s23 = sshll.u32 %s782_s22, 4  ;;  %s29_s9 = sshll.u32 %s783_s24, 4  ;;  %s147_s23 = int_to_ptr.vmem [resolvable:$true] %s146_s23  ;;  %s30_s9 = int_to_ptr.vmem [resolvable:$true] %s29_s9 }
  0x14   :  { %152 = dma.hbm_to_vmem [thread:$0]  %s145_s19, 256, %s147_s23, [#allocation18], %s777_s25, %s777_s25, %s778_s26  }
  0x15   :  { %s53_s29 = sshll.u32 %s928_s2, 4  ;;  %s79_s1 = sshll.u32 %s930_s4, 4  ;;  %s54_s29 = int_to_ptr.hbm [resolvable:$true] %s53_s29  ;;  %s80_s1 = int_to_ptr.hbm [resolvable:$true] %s79_s1 }
  0x16   :  { %35 = dma.hbm_to_vmem [thread:$0]  %s28_s21, 256, %s30_s9, [#allocation3], %s777_s25, %s777_s25, %s778_s26  }
  0x17   :  { %s784_s3 = smov [#allocation7]   ;;  %s785_s13 = smov [#allocation10]  }
  0x18   :  { %s55_s12 = sshll.u32 %s784_s3, 4  ;;  %s81_s2 = sshll.u32 %s785_s13, 4  ;;  %s56_s12 = int_to_ptr.vmem [resolvable:$true] %s55_s12  ;;  %s82_s2 = int_to_ptr.vmem [resolvable:$true] %s81_s2 }
  0x19   :  { %61 = dma.hbm_to_vmem [thread:$0]  %s54_s29, 256, %s56_s12, [#allocation6], %s777_s25, %s777_s25, %s778_s26  }
  0x1a   :  { %s105_s16 = sshll.u32 %s932_s6, 4  ;;  %s131_s17 = sshll.u32 %s934_s8, 4  ;;  %s106_s16 = int_to_ptr.hbm [resolvable:$true] %s105_s16  ;;  %s132_s17 = int_to_ptr.hbm [resolvable:$true] %s131_s17 }
  0x1b   :  { %87 = dma.hbm_to_vmem [thread:$0]  %s80_s1, 256, %s82_s2, [#allocation9], %s777_s25, %s777_s25, %s778_s26  }
  0x1c   :  { %s786_s18 = smov [#allocation13]   ;;  %s787_s7 = smov [#allocation16]  }
  0x1d   :  { %s107_s19 = sshll.u32 %s786_s18, 4  ;;  %s133_s6 = sshll.u32 %s787_s7, 4  ;;  %s108_s19 = int_to_ptr.vmem [resolvable:$true] %s107_s19  ;;  %s134_s6 = int_to_ptr.vmem [resolvable:$true] %s133_s6 }
  0x1e   :  { %113 = dma.hbm_to_vmem [thread:$0]  %s106_s16, 256, %s108_s19, [#allocation12], %s777_s25, %s777_s25, %s778_s26  }
  0x1f   :  { %s157_s22 = sshll.u32 %s936_s10, 4  ;;  %s788_s8 = smov [#allocation19]   ;;  %s158_s22 = int_to_ptr.hbm [resolvable:$true] %s157_s22 }
  0x20   :  { %139 = dma.hbm_to_vmem [thread:$0]  %s132_s17, 256, %s134_s6, [#allocation15], %s777_s25, %s777_s25, %s778_s26  }
  0x21   :  { %s159_s23 = sshll.u32 %s788_s8, 4  ;;  %s160_s23 = int_to_ptr.vmem [resolvable:$true] %s159_s23 }
  0x22   :  { %165 = dma.hbm_to_vmem [thread:$0]  %s158_s22, 256, %s160_s23, [#allocation18], %s777_s25, %s777_s25, %s778_s26  }
  0x23   :  { %762 = dma.done.wait [#allocation3], 256  }
  0x24   :  { %763 = vsyncadd [#allocation3], 4294967040 }
  0x25   :  { %764 = dma.done.wait [#allocation6], 768  }
  0x26   :  { %765 = vsyncadd [#allocation6], 4294966528 }
  0x27   :  { %766 = dma.done.wait [#allocation9], 512  }
  0x28   :  { %767 = vsyncadd [#allocation9], 4294966784 }
  0x29   :  { %768 = dma.done.wait [#allocation12], 2304  }
  0x2a   :  { %769 = vsyncadd [#allocation12], 4294964992 }
  0x2b   :  { %770 = dma.done.wait [#allocation15], 512  }
  0x2c   :  { %771 = vsyncadd [#allocation15], 4294966784 }
  0x2d   :  { %772 = dma.done.wait [#allocation18], 512  }
  0x2e   :  { %773 = vsyncadd [#allocation18], 4294966784  ;;  %v215_v0 = vld [vmem:[#allocation5 + $0x18] sm:$0xff]  ;;  %v214_v1 = vld [vmem:[#allocation5 + $0x10] sm:$0xff]  ;;  %vm218_vm0 = vcmask 261120   ;;  %vm325_vm7 = vcmask 130048  }
  0x2f   :  { %237 = vmatpush.msra.mxu0 %v215_v0  ;;  %v213_v2 = vld [vmem:[#allocation5 + $0x8] sm:$0xff]  ;;  %v264_v4 = vld [vmem:[#allocation11 + $0x70] sm:$0xff]  ;;  %v263_v6 = vld [vmem:[#allocation11 + $0x68] sm:$0xff]  ;;  %s789_s10 = smov [#allocation20]   ;;  %s428_s28 = sshll.u32 %s937_s11, 4  ;;  %s429_s28 = int_to_ptr.hbm [resolvable:$true] %s428_s28 }
  0x30   :  { %v265_v3 = vld [vmem:[#allocation11 + $0x78] sm:$0xff]  ;;  %v212_v5 = vld [vmem:[#allocation5] sm:$0xff]  ;;  %v210_v7 = vld [vmem:[#allocation2] sm:$0xff]  ;;  %s426_s24 = sshll.u32 %s789_s10, 4  ;;  %s427_s24 = int_to_ptr.vmem [resolvable:$true] %s426_s24 }
  0x31   :  { %238 = vmatpush.msra.mxu0 %v214_v1  ;;  %266 = vmatpush.msra.mxu1 %v265_v3  ;;  %v262_v8 = vld [vmem:[#allocation11 + $0x60] sm:$0xff]  ;;  %v261_v9 = vld [vmem:[#allocation11 + $0x58] sm:$0xff]  ;;  %v260_v10 = vld [vmem:[#allocation11 + $0x50] sm:$0xff] }
  0x32   :  { %v259_v11 = vld [vmem:[#allocation11 + $0x48] sm:$0xff]  ;;  %v258_v13 = vld [vmem:[#allocation11 + $0x40] sm:$0xff]  ;;  %v257_v14 = vld [vmem:[#allocation11 + $0x38] sm:$0xff] }
  0x33   :  { %239 = vmatpush.msra.mxu0 %v213_v2  ;;  %267 = vmatpush.msra.mxu1 %v264_v4  ;;  %v211_v12 = vld [vmem:[#allocation2 + $0x8] sm:$0xff]  ;;  %v256_v15 = vld [vmem:[#allocation11 + $0x30] sm:$0xff]  ;;  %v254_v17 = vld [vmem:[#allocation11 + $0x20] sm:$0xff] }
  0x34   :  { %v255_v16 = vld [vmem:[#allocation11 + $0x28] sm:$0xff]  ;;  %v253_v18 = vld [vmem:[#allocation11 + $0x18] sm:$0xff]  ;;  %v252_v19 = vld [vmem:[#allocation11 + $0x10] sm:$0xff] }
  0x35   :  { %240 = vmatpush.msra.mxu0 %v212_v5  ;;  %268 = vmatpush.msra.mxu1 %v263_v6  ;;  %v251_v20 = vld [vmem:[#allocation11 + $0x8] sm:$0xff]  ;;  %v250_v21 = vld [vmem:[#allocation11] sm:$0xff]  ;;  %v216_v22 = vld [vmem:[#allocation7] sm:$0xff] }
  0x36   :  { %446 = vmatmul.msk.f32.vlgmr.msra.gmra.mxu0 %vm218_vm0, %v210_v7  ;;  %v217_v26 = vld [vmem:[#allocation7 + $0x8] sm:$0xff]  ;;  %v309_v45 = vld [vmem:[#allocation8] sm:$0xff]  ;;  %v310_v49 = vld [vmem:[#allocation8 + $0x8] sm:$0xff] }
  0x37   :  { %269 = vmatpush.msra.mxu1 %v262_v8  ;;  %v316_v53 = vld [vmem:[#allocation10 + $0x8] sm:$0xff]  ;;  %v315_v54 = vld [vmem:[#allocation10] sm:$0xff]  ;;  %v321_v60 = vld [vmem:[#allocation13] sm:$0xff] }
  0x38   :  { %v322_v61 = vld [vmem:[#allocation13 + $0x8] sm:$0xff]  ;;  %v323_v63 = vld [vmem:[#allocation14] sm:$0xff]  ;;  %v324_v0 = vld [vmem:[#allocation14 + $0x8] sm:$0xff] }
  0x39   :  { %270 = vmatpush.msra.mxu1 %v261_v9  ;;  %v355_v6 = vld [vmem:[#allocation16] sm:$0xff]  ;;  %v356_v7 = vld [vmem:[#allocation16 + $0x8] sm:$0xff] }
  0x3b   :  { %271 = vmatpush.msra.mxu1 %v260_v10 }
  0x3d   :  { %272 = vmatpush.msra.mxu1 %v259_v11 }
  0x3e   :  { %447 = vmatmul.msk.f32.gmra.mxu0 %vm218_vm0, %v211_v12 }
  0x3f   :  { %273 = vmatpush.msra.mxu1 %v258_v13 }
  0x41   :  { %274 = vmatpush.msra.mxu1 %v257_v14 }
  0x43   :  { %275 = vmatpush.msra.mxu1 %v256_v15 }
  0x45   :  { %276 = vmatpush.msra.mxu1 %v255_v16 }
  0x47   :  { %277 = vmatpush.msra.mxu1 %v254_v17 }
  0x49   :  { %278 = vmatpush.msra.mxu1 %v253_v18 }
  0x4b   :  { %279 = vmatpush.msra.mxu1 %v252_v19  ;;  %v408_v19 = vld [vmem:[#allocation17] sm:$0xff] }
  0x4d   :  { %280 = vmatpush.msra.mxu1 %v251_v20 }
  0x4f   :  { %281 = vmatpush.msra.mxu1 %v250_v21 }
  0xb3   :  { %v242_v23 = vpop.f32.mrf.mxu0 }
  0xb4   :  { %v243_v24 = vadd.f32 %v242_v23, %v216_v22 }
  0xb6   :  { %v248_v25 = vmul.f32 %v243_v24, %v243_v24 }
  0xb8   :  { %282 = vmatmul.f32.vlgmr.msra.gmra.mxu1 %v248_v25  ;;  %v414_v25 = vld [vmem:[#allocation19] sm:$0xff] }
  0xbb   :  { %v245_v27 = vpop.f32.mrf.mxu0 }
  0xbc   :  { %v246_v28 = vadd.f32 %v245_v27, %v217_v26 }
  0xbe   :  { %v249_v29 = vmul.f32 %v246_v28, %v246_v28 }
  0xc0   :  { %285 = vmatmul.f32.gmra.mxu1 %v249_v29 }
 0x135   :  { %v283_v30 = vpop.f32.mrf.mxu1 }
 0x136   :  { %v284_v31 = vadd.f32 1e-05, %v283_v30  ;;  %v409_v30 = vld [vmem:[#allocation17 + $0x8] sm:$0xff] }
 0x138   :  { %466 = vrsqrt.f32 %v284_v31  ;;  %vm295_vm2 = vweird.f32 %v284_v31 }
 0x13d   :  { %v286_v32 = vpop.f32.mrf.mxu1 }
 0x13e   :  { %v467_v33 = vpop.eup %466  ;;  %v287_v34 = vadd.f32 1e-05, %v286_v32 }
 0x13f   :  { %v290_v35 = vmul.f32 %v467_v33, %v284_v31  ;;  %vm296_vm1 = vweird.f32 %v467_v33 }
 0x140   :  { %468 = vrsqrt.f32 %v287_v34  ;;  %vm297_vm3 = vmor %vm295_vm2, %vm296_vm1  ;;  %vm305_vm5 = vweird.f32 %v287_v34 }
 0x141   :  { %v291_v36 = vmul.f32 %v467_v33, %v290_v35 }
 0x143   :  { %v292_v37 = vmul.f32 0.5, %v291_v36 }
 0x145   :  { %v293_v38 = vsub.f32 1.5, %v292_v37 }
 0x146   :  { %v469_v39 = vpop.eup %468 }
 0x147   :  { %v294_v40 = vmul.f32 %v467_v33, %v293_v38  ;;  %v300_v41 = vmul.f32 %v469_v39, %v287_v34  ;;  %vm306_vm4 = vweird.f32 %v469_v39  ;;  %v415_v34 = vld [vmem:[#allocation19 + $0x8] sm:$0xff] }
 0x148   :  { %vm307_vm6 = vmor %vm305_vm5, %vm306_vm4 }
 0x149   :  { %v301_v42 = vmul.f32 %v469_v39, %v300_v41  ;;  %v298_v44 = vsel %vm297_vm3, %v467_v33, %v294_v40 }
 0x14a   :  { %v311_v47 = vmul.f32 %v309_v45, %v298_v44 }
 0x14b   :  { %v302_v43 = vmul.f32 0.5, %v301_v42 }
 0x14c   :  { %v313_v52 = vmul.f32 %v311_v47, %v243_v24 }
 0x14d   :  { %v303_v46 = vsub.f32 1.5, %v302_v43 }
 0x14e   :  { %v317_v57 = vadd.f32 %v315_v54, %v313_v52 }
 0x14f   :  { %v304_v48 = vmul.f32 %v469_v39, %v303_v46 }
 0x150   :  { %v319_v59 = vmax.f32 %v317_v57, 0.0 }
 0x151   :  { %v308_v50 = vsel %vm307_vm6, %v469_v39, %v304_v48 }
 0x152   :  { %v312_v51 = vmul.f32 %v310_v49, %v308_v50 }
 0x154   :  { %v314_v55 = vmul.f32 %v312_v51, %v246_v28 }
 0x156   :  { %v318_v56 = vadd.f32 %v316_v53, %v314_v55 }
 0x158   :  { %v320_v58 = vmax.f32 %v318_v56, 0.0 }
 0x15a   :  { %346 = vmatpush.msra.mxu2 %v320_v58 }
 0x15c   :  { %347 = vmatpush.msra.mxu2 %v319_v59 }
 0x15d   :  { %448 = vmatmul.msk.f32.vlgmr.msra.gmra.mxu2 %vm325_vm7, %v321_v60 }
 0x165   :  { %449 = vmatmul.msk.f32.gmra.mxu2 %vm325_vm7, %v322_v61 }
 0x1e0   :  { %v349_v62 = vpop.f32.mrf.mxu2 }
 0x1e1   :  { %v350_v2 = vadd.f32 %v349_v62, %v323_v63 }
 0x1e3   :  { %v357_v5 = vmul.f32 %v350_v2, %v350_v2 }
 0x1e8   :  { %v352_v1 = vpop.f32.mrf.mxu2 }
 0x1e9   :  { %v353_v3 = vadd.f32 %v352_v1, %v324_v0 }
 0x1eb   :  { %v358_v4 = vmul.f32 %v353_v3, %v353_v3 }
 0x1ed   :  { %379 = vmatpush.msra.mxu3 %v358_v4 }
 0x1ef   :  { %380 = vmatpush.msra.mxu3 %v357_v5 }
 0x1f0   :  { %450 = vmatmul.msk.f32.vlgmr.msra.gmra.mxu3 %vm325_vm7, %v355_v6 }
 0x1f8   :  { %451 = vmatmul.msk.f32.gmra.mxu3 %vm325_vm7, %v356_v7 }
 0x273   :  { %v382_v8 = vpop.f32.mrf.mxu3 }
 0x274   :  { %v383_v9 = vadd.f32 1e-05, %v382_v8 }
 0x276   :  { %470 = vrsqrt.f32 %v383_v9  ;;  %vm394_vm9 = vweird.f32 %v383_v9 }
 0x27b   :  { %v385_v10 = vpop.f32.mrf.mxu3 }
 0x27c   :  { %v471_v11 = vpop.eup %470  ;;  %v386_v12 = vadd.f32 1e-05, %v385_v10 }
 0x27d   :  { %v389_v13 = vmul.f32 %v471_v11, %v383_v9  ;;  %vm395_vm8 = vweird.f32 %v471_v11 }
 0x27e   :  { %472 = vrsqrt.f32 %v386_v12  ;;  %vm396_vm10 = vmor %vm394_vm9, %vm395_vm8  ;;  %vm404_vm12 = vweird.f32 %v386_v12 }
 0x27f   :  { %v390_v14 = vmul.f32 %v471_v11, %v389_v13 }
 0x281   :  { %v391_v15 = vmul.f32 0.5, %v390_v14 }
 0x283   :  { %v392_v16 = vsub.f32 1.5, %v391_v15 }
 0x284   :  { %v473_v17 = vpop.eup %472 }
 0x285   :  { %v393_v18 = vmul.f32 %v471_v11, %v392_v16  ;;  %v399_v20 = vmul.f32 %v473_v17, %v386_v12  ;;  %vm405_vm11 = vweird.f32 %v473_v17 }
 0x286   :  { %vm406_vm13 = vmor %vm404_vm12, %vm405_vm11 }
 0x287   :  { %v397_v21 = vsel %vm396_vm10, %v471_v11, %v393_v18  ;;  %v400_v22 = vmul.f32 %v473_v17, %v399_v20 }
 0x288   :  { %v410_v23 = vmul.f32 %v408_v19, %v397_v21 }
 0x289   :  { %v401_v24 = vmul.f32 0.5, %v400_v22 }
 0x28a   :  { %v412_v26 = vmul.f32 %v410_v23, %v350_v2 }
 0x28b   :  { %v402_v27 = vsub.f32 1.5, %v401_v24 }
 0x28c   :  { %v416_v28 = vadd.f32 %v414_v25, %v412_v26 }
 0x28d   :  { %v403_v29 = vmul.f32 %v473_v17, %v402_v27 }
 0x28e   :  { %v418_v31 = vmax.f32 %v416_v28, 0.0 }
 0x28f   :  { %v407_v32 = vsel %vm406_vm13, %v473_v17, %v403_v29 }
 0x290   :  { %v411_v33 = vmul.f32 %v409_v30, %v407_v32  ;;  %420 = vst [vmem:[#allocation20] sm:$0xff] %v418_v31 }
 0x292   :  { %v413_v35 = vmul.f32 %v411_v33, %v353_v3 }
 0x294   :  { %v417_v36 = vadd.f32 %v415_v34, %v413_v35 }
 0x296   :  { %v419_v37 = vmax.f32 %v417_v36, 0.0 }
 0x298   :  { %421 = vst [vmem:[#allocation20 + $0x8] sm:$0xff] %v419_v37 }
 0x299   :  { %434 = dma.vmem_to_hbm [thread:$0]  %s427_s24, 256, %s429_s28, [#allocation4], %s777_s25, %s777_s25, %s778_s26  }
 0x29a   :  { %774 = dma.done.wait [#allocation4], 256  }
 0x29b   :  { %775 = vsyncadd [#allocation4], 4294967040 }
 0x29c   :  { %439 = vsyncpa [#allocation3], 1 }
 0x29d   :  { %440 = vsyncpa [#allocation6], 1 }
 0x29e   :  { %441 = vsyncpa [#allocation9], 1 }
 0x29f   :  { %442 = vsyncpa [#allocation12], 1 }
 0x2a0   :  { %443 = vsyncpa [#allocation15], 1 }
 0x2a1   :  { %444 = vsyncpa [#allocation18], 1 }
 0x2a2   :  { %445 = vsyncpa [#allocation4], 1 }

</bundles_post_ra>
